<compile_context>
chip_gen: v5e
topology: v5e:2x2
jax: 0.10.0
libtpu: 0.0.40
codegen_flags: <defaults>
</compile_context>

<pallas_src>
import functools
import math

import jax
import jax.numpy as jnp
from jax.experimental import pallas as pl
from jax.experimental.pallas import tpu as pltpu

H = 4                 # number of heads
D_MODEL = 32          # model dim
D_K = D_MODEL // H    # per-head dim


def _mha_kernel(q_ref, k_ref, v_ref, wqkv_ref, b_ref, wo_ref, o_ref, *,
                bt, seq, compute_dtype):
    """Fused MHA forward for one batch tile.

    q_ref/k_ref/v_ref: (n_tok, D) token tiles, n_tok = bt * seq
    wqkv_ref:          (3, D, D) stacked Wq/Wk/Wv (x @ W convention; Wq pre-scaled
                       by 1/sqrt(d_k))
    b_ref:             (4, 1, D) stacked biases [bq*scale; bk; bv; bo]
    wo_ref:            (D, D)    output projection weight
    o_ref:             (n_tok, D) output tokens
    """
    cd = compute_dtype
    n_tok = bt * seq

    # ---- Q/K/V projections: (n_tok, 32) @ (32, 32), f32 accumulation. ----
    q = jnp.dot(q_ref[...].astype(cd), wqkv_ref[0].astype(cd),
                preferred_element_type=jnp.float32) + b_ref[0]
    k = jnp.dot(k_ref[...].astype(cd), wqkv_ref[1].astype(cd),
                preferred_element_type=jnp.float32) + b_ref[1]
    v = jnp.dot(v_ref[...].astype(cd), wqkv_ref[2].astype(cd),
                preferred_element_type=jnp.float32) + b_ref[2]

    # ---- Attention, batched over the batch-tile axis (no cross-batch mask). ----
    ctx_heads = []
    for h in range(H):                               # static unroll over 4 heads
        sl = slice(h * D_K, (h + 1) * D_K)
        qh = q[:, sl].reshape(bt, seq, D_K).astype(cd)   # leading-dim split: free
        kh = k[:, sl].reshape(bt, seq, D_K).astype(cd)
        vh = v[:, sl].reshape(bt, seq, D_K).astype(cd)
        # q @ k^T without materializing a transpose (scale already folded into q).
        s = jnp.einsum("bqd,bkd->bqk", qh, kh,
                       preferred_element_type=jnp.float32)      # (bt, S, S) f32
        # Numerically stable softmax in f32; divide uses the EUP approximate
        # reciprocal (separate issue slot).
        s = s - jnp.max(s, axis=-1, keepdims=True)
        e = jnp.exp(s)
        p = e * pl.reciprocal(jnp.sum(e, axis=-1, keepdims=True), approx=True)
        ctx_h = jnp.einsum("bqk,bkd->bqd", p.astype(cd), vh,
                           preferred_element_type=jnp.float32)  # (bt, S, D_K) f32
        ctx_heads.append(ctx_h.reshape(n_tok, D_K))

    # Head-minor concat along lanes -> one dense contraction-32 output projection.
    ctx = jnp.concatenate(ctx_heads, axis=-1)                   # (n_tok, 32)
    out = jnp.dot(ctx.astype(cd), wo_ref[...].astype(cd),
                  preferred_element_type=jnp.float32) + b_ref[3]
    o_ref[...] = out.astype(o_ref.dtype)


def _pick_batch_tile(B, S):
    """Choose batch elements per grid step.

    Targets >= 8 grid steps (software pipelining of input/output DMAs), falls back
    to >= 2 steps (needed so dimension_semantics=('parallel',) can shard across
    v7x's two TensorCores), keeps bt*S a multiple of 8 (sublane constraint) and
    bounds the per-step f32 working set to a few MiB so it stays inside the
    32 MiB scoped VMEM limit on every generation (v7x: 64 MiB physical).
    """
    budget = 8 * 1024 * 1024  # rough per-step live-bytes budget

    def valid(d):
        n_tok = d * S
        if n_tok % 8 != 0 and d != B:
            return False
        score_bytes = 3 * 4 * d * S * S           # scores/exp/probs for one head
        token_bytes = 10 * 4 * n_tok * D_MODEL    # q/k/v/ctx/out + buffered IO blocks
        return score_bytes + token_bytes <= budget

    divisors = [d for d in range(1, B + 1) if B % d == 0 and valid(d)]
    if not divisors:
        # Fallback for extreme shapes; may exceed the budget (see flash TODO).
        return 1 if (S % 8 == 0 or B == 1) else B
    pipelined = [d for d in divisors if B // d >= 8]
    if pipelined:
        return max(pipelined)
    two_step = [d for d in divisors if B // d >= 2]
    if two_step:
        return max(two_step)
    return min(divisors)


def multi_headed_attention(query, key, value, params, *,
                           batch_tile=None, compute_dtype=jnp.float32):
    """query/key/value: (B, S, D) float32. params: dict of weights/biases.

    batch_tile:    batch elements per grid step (default: auto-picked so the grid
                   has multiple steps and the tile fits VMEM on all generations).
    compute_dtype: jnp.float32 (default) or jnp.bfloat16 for matmul operands
                   (recommended on v6e/v7x at scaled-up shapes; accumulation,
                   softmax and bias adds stay f32 either way).
    """
    B, S, D = query.shape
    assert D == D_MODEL
    bt = _pick_batch_tile(B, S) if batch_tile is None else batch_tile
    assert B % bt == 0, "batch must be divisible by batch_tile"
    n_tok = bt * S
    assert (n_tok % 8 == 0) or (bt == B), (
        "batch_tile * seq must be a multiple of 8 (sublane tiling) or cover the "
        "full batch")

    # Fold the 1/sqrt(d_k) score scale into Wq/bq (one tiny (32,32) scale, outside
    # the kernel). Pack the 3 projection weights and 4 biases (weights are tiny).
    scale = jnp.float32(1.0 / math.sqrt(D_K))
    w_qkv = jnp.stack([params["wq"] * scale, params["wk"], params["wv"]], axis=0)
    b_all = jnp.stack([params["bq"] * scale, params["bk"], params["bv"],
                       params["bo"]], axis=0)                       # (4, 1, D)

    # Contiguous (free) reshapes; q/k/v go to the kernel as three separate inputs
    # (no extra HBM pass from stacking activations).
    q2 = query.reshape(B * S, D)
    k2 = key.reshape(B * S, D)
    v2 = value.reshape(B * S, D)

    kernel = functools.partial(_mha_kernel, bt=bt, seq=S, compute_dtype=compute_dtype)

    out = pl.pallas_call(
        kernel,
        out_shape=jax.ShapeDtypeStruct((B * S, D), jnp.float32),
        grid_spec=pltpu.PrefetchScalarGridSpec(
            num_scalar_prefetch=0,
            grid=(B // bt,),
            in_specs=[
                pl.BlockSpec((n_tok, D), lambda i: (i, 0)),
                pl.BlockSpec((n_tok, D), lambda i: (i, 0)),
                pl.BlockSpec((n_tok, D), lambda i: (i, 0)),
                pl.BlockSpec((3, D, D), lambda i: (0, 0, 0)),
                pl.BlockSpec((4, 1, D), lambda i: (0, 0, 0)),
                pl.BlockSpec((D, D), lambda i: (0, 0)),
            ],
            out_specs=pl.BlockSpec((n_tok, D), lambda i: (i, 0)),
        ),
        compiler_params=pltpu.CompilerParams(
            dimension_semantics=("parallel",),
            # Raise v5e's 16 MiB scoped default; neutral (== default) on v6e/v7x
            # and safely below v7x's 64 MiB physical VMEM.
            vmem_limit_bytes=32 * 1024 * 1024,
        ),
    )(q2, k2, v2, w_qkv, b_all, params["wo"])

    return out.reshape(B, S, D)


def init_params(key):
    """Deterministic init mimicking torch.nn.Linear (uniform +-1/sqrt(fan_in))."""
    bound = 1.0 / math.sqrt(D_MODEL)
    keys = jax.random.split(key, 8)

    def u(k, shape):
        return jax.random.uniform(k, shape, jnp.float32, -bound, bound)

    return {
        "wq": u(keys[0], (D_MODEL, D_MODEL)), "bq": u(keys[1], (1, D_MODEL)),
        "wk": u(keys[2], (D_MODEL, D_MODEL)), "bk": u(keys[3], (1, D_MODEL)),
        "wv": u(keys[4], (D_MODEL, D_MODEL)), "bv": u(keys[5], (1, D_MODEL)),
        "wo": u(keys[6], (D_MODEL, D_MODEL)), "bo": u(keys[7], (1, D_MODEL)),
    }


def reference_mha(query, key, value, params):
    """Pure-JAX reference reproducing the PyTorch forward (eval mode, mask=None)."""
    B, S, D = query.shape

    def proj(x, w, b):
        return x @ w + b

    q = proj(query, params["wq"], params["bq"]).reshape(B, S, H, D_K).transpose(0, 2, 1, 3)
    k = proj(key,   params["wk"], params["bk"]).reshape(B, S, H, D_K).transpose(0, 2, 1, 3)
    v = proj(value, params["wv"], params["bv"]).reshape(B, S, H, D_K).transpose(0, 2, 1, 3)
    scores = jnp.einsum("bhqd,bhkd->bhqk", q, k) / math.sqrt(D_K)
    p = jax.nn.softmax(scores, axis=-1)
    ctx = jnp.einsum("bhqk,bhkd->bhqd", p, v)
    ctx = ctx.transpose(0, 2, 1, 3).reshape(B, S, D)
    return ctx @ params["wo"] + params["bo"]


if __name__ == "__main__":
    root = jax.random.PRNGKey(0)
    k_q, k_k, k_v, k_p = jax.random.split(root, 4)
    params = init_params(k_p)

    # Small shape consistent with the module (h=4, d_model=32): B=2, S=8.
    B, S = 2, 8
    query = jax.random.normal(k_q, (B, S, D_MODEL), jnp.float32)
    key_in = jax.random.normal(k_k, (B, S, D_MODEL), jnp.float32)
    value = jax.random.normal(k_v, (B, S, D_MODEL), jnp.float32)

    out = jax.block_until_ready(multi_headed_attention(query, key_in, value, params))
    ref = reference_mha(query, key_in, value, params)
    assert out.shape == (B, S, D_MODEL)
    # Tolerance accounts for the EUP approximate reciprocal in the softmax denom.
    assert jnp.allclose(out, ref, atol=5e-3, rtol=5e-3), "f32 mismatch vs reference"

    # Also exercise the multi-step pipelined grid and the bf16-operand path
    # (the v6e/v7x recommendation) at a slightly larger, still tiny, shape.
    B2, S2 = 8, 16
    k_q2, k_k2, k_v2 = jax.random.split(jax.random.PRNGKey(1), 3)
    q2 = jax.random.normal(k_q2, (B2, S2, D_MODEL), jnp.float32)
    k2 = jax.random.normal(k_k2, (B2, S2, D_MODEL), jnp.float32)
    v2 = jax.random.normal(k_v2, (B2, S2, D_MODEL), jnp.float32)
    out2 = jax.block_until_ready(
        multi_headed_attention(q2, k2, v2, params, compute_dtype=jnp.bfloat16))
    ref2 = reference_mha(q2, k2, v2, params)
    assert out2.shape == (B2, S2, D_MODEL)
    assert jnp.allclose(out2, ref2, atol=5e-2, rtol=5e-2), "bf16 mismatch vs reference"

    print("KERNEL_OK")
</pallas_src>

<mosaic_0001>
module attributes {stable_mosaic.version = 11 : i64} {
  func.func @_mha_kernel(%arg0: i32, %arg1: memref<8x32xf32, #tpu.memory_space<vmem>>, %arg2: memref<8x32xf32, #tpu.memory_space<vmem>>, %arg3: memref<8x32xf32, #tpu.memory_space<vmem>>, %arg4: memref<3x32x32xf32, #tpu.memory_space<vmem>>, %arg5: memref<4x1x32xf32, #tpu.memory_space<vmem>>, %arg6: memref<32x32xf32, #tpu.memory_space<vmem>>, %arg7: memref<8x32xf32, #tpu.memory_space<vmem>>) attributes {dimension_semantics = [#tpu.dimension_semantics<parallel>], iteration_bounds = array<i64: 2>, scalar_prefetch = 0 : i64, scratch_operands = 0 : i64, tpu.core_type = #tpu.core_type<tc>, window_params = [{transform_indices = @transform_0, window_bounds = array<i64: 8, 32>}, {transform_indices = @transform_1, window_bounds = array<i64: 8, 32>}, {transform_indices = @transform_2, window_bounds = array<i64: 8, 32>}, {pipeline_mode = #tpu.pipeline_mode<synchronous>, transform_indices = @transform_3, window_bounds = array<i64: 3, 32, 32>}, {pipeline_mode = #tpu.pipeline_mode<synchronous>, transform_indices = @transform_4, window_bounds = array<i64: 4, 1, 32>}, {pipeline_mode = #tpu.pipeline_mode<synchronous>, transform_indices = @transform_5, window_bounds = array<i64: 32, 32>}, {transform_indices = @transform_6, window_bounds = array<i64: 8, 32>}]} {
    %c0 = arith.constant 0 : index
    %c0_0 = arith.constant 0 : index
    %0 = vector.load %arg1[%c0, %c0_0] : memref<8x32xf32, #tpu.memory_space<vmem>>, vector<8x32xf32>
    %c0_1 = arith.constant 0 : index
    %c0_2 = arith.constant 0 : index
    %c0_3 = arith.constant 0 : index
    %1 = vector.load %arg4[%c0_1, %c0_2, %c0_3] : memref<3x32x32xf32, #tpu.memory_space<vmem>>, vector<1x32x32xf32>
    %2 = vector.shape_cast %1 : vector<1x32x32xf32> to vector<32x32xf32>
    %cst = arith.constant dense<0.000000e+00> : vector<8x32xf32>
    %3 = tpu.matmul %0, %2, %cst {dimension_numbers = #tpu.dot_dimension_numbers<[1], [0], [0], [1], [0, 0, 1, 1], [], []>} : vector<8x32xf32>, vector<32x32xf32>, vector<8x32xf32> -> vector<8x32xf32>
    %c0_4 = arith.constant 0 : index
    %c0_5 = arith.constant 0 : index
    %c0_6 = arith.constant 0 : index
    %4 = vector.load %arg5[%c0_4, %c0_5, %c0_6] : memref<4x1x32xf32, #tpu.memory_space<vmem>>, vector<1x1x32xf32>
    %5 = vector.shape_cast %4 : vector<1x1x32xf32> to vector<1x32xf32>
    %6 = vector.broadcast %5 : vector<1x32xf32> to vector<8x32xf32>
    %7 = arith.addf %3, %6 : vector<8x32xf32>
    %c0_7 = arith.constant 0 : index
    %c0_8 = arith.constant 0 : index
    %8 = vector.load %arg2[%c0_7, %c0_8] : memref<8x32xf32, #tpu.memory_space<vmem>>, vector<8x32xf32>
    %c1 = arith.constant 1 : index
    %c0_9 = arith.constant 0 : index
    %c0_10 = arith.constant 0 : index
    %9 = vector.load %arg4[%c1, %c0_9, %c0_10] : memref<3x32x32xf32, #tpu.memory_space<vmem>>, vector<1x32x32xf32>
    %10 = vector.shape_cast %9 : vector<1x32x32xf32> to vector<32x32xf32>
    %cst_11 = arith.constant dense<0.000000e+00> : vector<8x32xf32>
    %11 = tpu.matmul %8, %10, %cst_11 {dimension_numbers = #tpu.dot_dimension_numbers<[1], [0], [0], [1], [0, 0, 1, 1], [], []>} : vector<8x32xf32>, vector<32x32xf32>, vector<8x32xf32> -> vector<8x32xf32>
    %c1_12 = arith.constant 1 : index
    %c0_13 = arith.constant 0 : index
    %c0_14 = arith.constant 0 : index
    %12 = vector.load %arg5[%c1_12, %c0_13, %c0_14] : memref<4x1x32xf32, #tpu.memory_space<vmem>>, vector<1x1x32xf32>
    %13 = vector.shape_cast %12 : vector<1x1x32xf32> to vector<1x32xf32>
    %14 = vector.broadcast %13 : vector<1x32xf32> to vector<8x32xf32>
    %15 = arith.addf %11, %14 : vector<8x32xf32>
    %c0_15 = arith.constant 0 : index
    %c0_16 = arith.constant 0 : index
    %16 = vector.load %arg3[%c0_15, %c0_16] : memref<8x32xf32, #tpu.memory_space<vmem>>, vector<8x32xf32>
    %c2 = arith.constant 2 : index
    %c0_17 = arith.constant 0 : index
    %c0_18 = arith.constant 0 : index
    %17 = vector.load %arg4[%c2, %c0_17, %c0_18] : memref<3x32x32xf32, #tpu.memory_space<vmem>>, vector<1x32x32xf32>
    %18 = vector.shape_cast %17 : vector<1x32x32xf32> to vector<32x32xf32>
    %cst_19 = arith.constant dense<0.000000e+00> : vector<8x32xf32>
    %19 = tpu.matmul %16, %18, %cst_19 {dimension_numbers = #tpu.dot_dimension_numbers<[1], [0], [0], [1], [0, 0, 1, 1], [], []>} : vector<8x32xf32>, vector<32x32xf32>, vector<8x32xf32> -> vector<8x32xf32>
    %c2_20 = arith.constant 2 : index
    %c0_21 = arith.constant 0 : index
    %c0_22 = arith.constant 0 : index
    %20 = vector.load %arg5[%c2_20, %c0_21, %c0_22] : memref<4x1x32xf32, #tpu.memory_space<vmem>>, vector<1x1x32xf32>
    %21 = vector.shape_cast %20 : vector<1x1x32xf32> to vector<1x32xf32>
    %22 = vector.broadcast %21 : vector<1x32xf32> to vector<8x32xf32>
    %23 = arith.addf %19, %22 : vector<8x32xf32>
    %24 = vector.extract_strided_slice %7 {offsets = [0, 0], sizes = [8, 8], strides = [1, 1]} : vector<8x32xf32> to vector<8x8xf32>
    %25 = vector.shape_cast %24 : vector<8x8xf32> to vector<1x8x8xf32>
    %26 = vector.extract_strided_slice %15 {offsets = [0, 0], sizes = [8, 8], strides = [1, 1]} : vector<8x32xf32> to vector<8x8xf32>
    %27 = vector.shape_cast %26 : vector<8x8xf32> to vector<1x8x8xf32>
    %28 = vector.extract_strided_slice %23 {offsets = [0, 0], sizes = [8, 8], strides = [1, 1]} : vector<8x32xf32> to vector<8x8xf32>
    %29 = vector.shape_cast %28 : vector<8x8xf32> to vector<1x8x8xf32>
    "tpu.trace_start"() <{level = 10 : i32, message = "bqd,bkd->bqk"}> : () -> ()
    %cst_23 = arith.constant dense<0.000000e+00> : vector<1x8x8xf32>
    %30 = tpu.matmul %25, %27, %cst_23 {dimension_numbers = #tpu.dot_dimension_numbers<[2], [2], [1], [1], [0, 0, 0, 1, 1, 1], [0], [0]>} : vector<1x8x8xf32>, vector<1x8x8xf32>, vector<1x8x8xf32> -> vector<1x8x8xf32>
    "tpu.trace_stop"() : () -> ()
    %cst_24 = arith.constant dense<0xFF800000> : vector<1x8xf32>
    %31 = vector.multi_reduction <maximumf>, %30, %cst_24 [2] : vector<1x8x8xf32> to vector<1x8xf32>
    %32 = vector.shape_cast %31 : vector<1x8xf32> to vector<1x8x1xf32>
    %33 = vector.broadcast %32 : vector<1x8x1xf32> to vector<1x8x8xf32>
    %34 = arith.subf %30, %33 : vector<1x8x8xf32>
    %35 = math.exp %34 : vector<1x8x8xf32>
    %cst_25 = arith.constant dense<0.000000e+00> : vector<1x8xf32>
    %36 = vector.multi_reduction <add>, %35, %cst_25 [2] : vector<1x8x8xf32> to vector<1x8xf32>
    %37 = vector.shape_cast %36 : vector<1x8xf32> to vector<1x8x1xf32>
    %38 = tpu.reciprocal %37 {approx = true} : vector<1x8x1xf32> -> vector<1x8x1xf32>
    %39 = vector.broadcast %38 : vector<1x8x1xf32> to vector<1x8x8xf32>
    %40 = arith.mulf %35, %39 : vector<1x8x8xf32>
    "tpu.trace_start"() <{level = 10 : i32, message = "bqk,bkd->bqd"}> : () -> ()
    %cst_26 = arith.constant dense<0.000000e+00> : vector<1x8x8xf32>
    %41 = tpu.matmul %40, %29, %cst_26 {dimension_numbers = #tpu.dot_dimension_numbers<[2], [1], [1], [2], [0, 0, 0, 1, 1, 2], [0], [0]>} : vector<1x8x8xf32>, vector<1x8x8xf32>, vector<1x8x8xf32> -> vector<1x8x8xf32>
    "tpu.trace_stop"() : () -> ()
    %42 = vector.shape_cast %41 : vector<1x8x8xf32> to vector<8x8xf32>
    %43 = vector.extract_strided_slice %7 {offsets = [0, 8], sizes = [8, 8], strides = [1, 1]} : vector<8x32xf32> to vector<8x8xf32>
    %44 = vector.shape_cast %43 : vector<8x8xf32> to vector<1x8x8xf32>
    %45 = vector.extract_strided_slice %15 {offsets = [0, 8], sizes = [8, 8], strides = [1, 1]} : vector<8x32xf32> to vector<8x8xf32>
    %46 = vector.shape_cast %45 : vector<8x8xf32> to vector<1x8x8xf32>
    %47 = vector.extract_strided_slice %23 {offsets = [0, 8], sizes = [8, 8], strides = [1, 1]} : vector<8x32xf32> to vector<8x8xf32>
    %48 = vector.shape_cast %47 : vector<8x8xf32> to vector<1x8x8xf32>
    "tpu.trace_start"() <{level = 10 : i32, message = "bqd,bkd->bqk"}> : () -> ()
    %cst_27 = arith.constant dense<0.000000e+00> : vector<1x8x8xf32>
    %49 = tpu.matmul %44, %46, %cst_27 {dimension_numbers = #tpu.dot_dimension_numbers<[2], [2], [1], [1], [0, 0, 0, 1, 1, 1], [0], [0]>} : vector<1x8x8xf32>, vector<1x8x8xf32>, vector<1x8x8xf32> -> vector<1x8x8xf32>
    "tpu.trace_stop"() : () -> ()
    %cst_28 = arith.constant dense<0xFF800000> : vector<1x8xf32>
    %50 = vector.multi_reduction <maximumf>, %49, %cst_28 [2] : vector<1x8x8xf32> to vector<1x8xf32>
    %51 = vector.shape_cast %50 : vector<1x8xf32> to vector<1x8x1xf32>
    %52 = vector.broadcast %51 : vector<1x8x1xf32> to vector<1x8x8xf32>
    %53 = arith.subf %49, %52 : vector<1x8x8xf32>
    %54 = math.exp %53 : vector<1x8x8xf32>
    %cst_29 = arith.constant dense<0.000000e+00> : vector<1x8xf32>
    %55 = vector.multi_reduction <add>, %54, %cst_29 [2] : vector<1x8x8xf32> to vector<1x8xf32>
    %56 = vector.shape_cast %55 : vector<1x8xf32> to vector<1x8x1xf32>
    %57 = tpu.reciprocal %56 {approx = true} : vector<1x8x1xf32> -> vector<1x8x1xf32>
    %58 = vector.broadcast %57 : vector<1x8x1xf32> to vector<1x8x8xf32>
    %59 = arith.mulf %54, %58 : vector<1x8x8xf32>
    "tpu.trace_start"() <{level = 10 : i32, message = "bqk,bkd->bqd"}> : () -> ()
    %cst_30 = arith.constant dense<0.000000e+00> : vector<1x8x8xf32>
    %60 = tpu.matmul %59, %48, %cst_30 {dimension_numbers = #tpu.dot_dimension_numbers<[2], [1], [1], [2], [0, 0, 0, 1, 1, 2], [0], [0]>} : vector<1x8x8xf32>, vector<1x8x8xf32>, vector<1x8x8xf32> -> vector<1x8x8xf32>
    "tpu.trace_stop"() : () -> ()
    %61 = vector.shape_cast %60 : vector<1x8x8xf32> to vector<8x8xf32>
    %62 = vector.extract_strided_slice %7 {offsets = [0, 16], sizes = [8, 8], strides = [1, 1]} : vector<8x32xf32> to vector<8x8xf32>
    %63 = vector.shape_cast %62 : vector<8x8xf32> to vector<1x8x8xf32>
    %64 = vector.extract_strided_slice %15 {offsets = [0, 16], sizes = [8, 8], strides = [1, 1]} : vector<8x32xf32> to vector<8x8xf32>
    %65 = vector.shape_cast %64 : vector<8x8xf32> to vector<1x8x8xf32>
    %66 = vector.extract_strided_slice %23 {offsets = [0, 16], sizes = [8, 8], strides = [1, 1]} : vector<8x32xf32> to vector<8x8xf32>
    %67 = vector.shape_cast %66 : vector<8x8xf32> to vector<1x8x8xf32>
    "tpu.trace_start"() <{level = 10 : i32, message = "bqd,bkd->bqk"}> : () -> ()
    %cst_31 = arith.constant dense<0.000000e+00> : vector<1x8x8xf32>
    %68 = tpu.matmul %63, %65, %cst_31 {dimension_numbers = #tpu.dot_dimension_numbers<[2], [2], [1], [1], [0, 0, 0, 1, 1, 1], [0], [0]>} : vector<1x8x8xf32>, vector<1x8x8xf32>, vector<1x8x8xf32> -> vector<1x8x8xf32>
    "tpu.trace_stop"() : () -> ()
    %cst_32 = arith.constant dense<0xFF800000> : vector<1x8xf32>
    %69 = vector.multi_reduction <maximumf>, %68, %cst_32 [2] : vector<1x8x8xf32> to vector<1x8xf32>
    %70 = vector.shape_cast %69 : vector<1x8xf32> to vector<1x8x1xf32>
    %71 = vector.broadcast %70 : vector<1x8x1xf32> to vector<1x8x8xf32>
    %72 = arith.subf %68, %71 : vector<1x8x8xf32>
    %73 = math.exp %72 : vector<1x8x8xf32>
    %cst_33 = arith.constant dense<0.000000e+00> : vector<1x8xf32>
    %74 = vector.multi_reduction <add>, %73, %cst_33 [2] : vector<1x8x8xf32> to vector<1x8xf32>
    %75 = vector.shape_cast %74 : vector<1x8xf32> to vector<1x8x1xf32>
    %76 = tpu.reciprocal %75 {approx = true} : vector<1x8x1xf32> -> vector<1x8x1xf32>
    %77 = vector.broadcast %76 : vector<1x8x1xf32> to vector<1x8x8xf32>
    %78 = arith.mulf %73, %77 : vector<1x8x8xf32>
    "tpu.trace_start"() <{level = 10 : i32, message = "bqk,bkd->bqd"}> : () -> ()
    %cst_34 = arith.constant dense<0.000000e+00> : vector<1x8x8xf32>
    %79 = tpu.matmul %78, %67, %cst_34 {dimension_numbers = #tpu.dot_dimension_numbers<[2], [1], [1], [2], [0, 0, 0, 1, 1, 2], [0], [0]>} : vector<1x8x8xf32>, vector<1x8x8xf32>, vector<1x8x8xf32> -> vector<1x8x8xf32>
    "tpu.trace_stop"() : () -> ()
    %80 = vector.shape_cast %79 : vector<1x8x8xf32> to vector<8x8xf32>
    %81 = vector.extract_strided_slice %7 {offsets = [0, 24], sizes = [8, 8], strides = [1, 1]} : vector<8x32xf32> to vector<8x8xf32>
    %82 = vector.shape_cast %81 : vector<8x8xf32> to vector<1x8x8xf32>
    %83 = vector.extract_strided_slice %15 {offsets = [0, 24], sizes = [8, 8], strides = [1, 1]} : vector<8x32xf32> to vector<8x8xf32>
    %84 = vector.shape_cast %83 : vector<8x8xf32> to vector<1x8x8xf32>
    %85 = vector.extract_strided_slice %23 {offsets = [0, 24], sizes = [8, 8], strides = [1, 1]} : vector<8x32xf32> to vector<8x8xf32>
    %86 = vector.shape_cast %85 : vector<8x8xf32> to vector<1x8x8xf32>
    "tpu.trace_start"() <{level = 10 : i32, message = "bqd,bkd->bqk"}> : () -> ()
    %cst_35 = arith.constant dense<0.000000e+00> : vector<1x8x8xf32>
    %87 = tpu.matmul %82, %84, %cst_35 {dimension_numbers = #tpu.dot_dimension_numbers<[2], [2], [1], [1], [0, 0, 0, 1, 1, 1], [0], [0]>} : vector<1x8x8xf32>, vector<1x8x8xf32>, vector<1x8x8xf32> -> vector<1x8x8xf32>
    "tpu.trace_stop"() : () -> ()
    %cst_36 = arith.constant dense<0xFF800000> : vector<1x8xf32>
    %88 = vector.multi_reduction <maximumf>, %87, %cst_36 [2] : vector<1x8x8xf32> to vector<1x8xf32>
    %89 = vector.shape_cast %88 : vector<1x8xf32> to vector<1x8x1xf32>
    %90 = vector.broadcast %89 : vector<1x8x1xf32> to vector<1x8x8xf32>
    %91 = arith.subf %87, %90 : vector<1x8x8xf32>
    %92 = math.exp %91 : vector<1x8x8xf32>
    %cst_37 = arith.constant dense<0.000000e+00> : vector<1x8xf32>
    %93 = vector.multi_reduction <add>, %92, %cst_37 [2] : vector<1x8x8xf32> to vector<1x8xf32>
    %94 = vector.shape_cast %93 : vector<1x8xf32> to vector<1x8x1xf32>
    %95 = tpu.reciprocal %94 {approx = true} : vector<1x8x1xf32> -> vector<1x8x1xf32>
    %96 = vector.broadcast %95 : vector<1x8x1xf32> to vector<1x8x8xf32>
    %97 = arith.mulf %92, %96 : vector<1x8x8xf32>
    "tpu.trace_start"() <{level = 10 : i32, message = "bqk,bkd->bqd"}> : () -> ()
    %cst_38 = arith.constant dense<0.000000e+00> : vector<1x8x8xf32>
    %98 = tpu.matmul %97, %86, %cst_38 {dimension_numbers = #tpu.dot_dimension_numbers<[2], [1], [1], [2], [0, 0, 0, 1, 1, 2], [0], [0]>} : vector<1x8x8xf32>, vector<1x8x8xf32>, vector<1x8x8xf32> -> vector<1x8x8xf32>
    "tpu.trace_stop"() : () -> ()
    %99 = vector.shape_cast %98 : vector<1x8x8xf32> to vector<8x8xf32>
    %100 = tpu.concatenate %42, %61, %80, %99 in 1 : vector<8x8xf32>, vector<8x8xf32>, vector<8x8xf32>, vector<8x8xf32> -> vector<8x32xf32>
    %c0_39 = arith.constant 0 : index
    %c0_40 = arith.constant 0 : index
    %101 = vector.load %arg6[%c0_39, %c0_40] : memref<32x32xf32, #tpu.memory_space<vmem>>, vector<32x32xf32>
    %cst_41 = arith.constant dense<0.000000e+00> : vector<8x32xf32>
    %102 = tpu.matmul %100, %101, %cst_41 {dimension_numbers = #tpu.dot_dimension_numbers<[1], [0], [0], [1], [0, 0, 1, 1], [], []>} : vector<8x32xf32>, vector<32x32xf32>, vector<8x32xf32> -> vector<8x32xf32>
    %c3 = arith.constant 3 : index
    %c0_42 = arith.constant 0 : index
    %c0_43 = arith.constant 0 : index
    %103 = vector.load %arg5[%c3, %c0_42, %c0_43] : memref<4x1x32xf32, #tpu.memory_space<vmem>>, vector<1x1x32xf32>
    %104 = vector.shape_cast %103 : vector<1x1x32xf32> to vector<1x32xf32>
    %105 = vector.broadcast %104 : vector<1x32xf32> to vector<8x32xf32>
    %106 = arith.addf %102, %105 : vector<8x32xf32>
    %c0_44 = arith.constant 0 : index
    %c0_45 = arith.constant 0 : index
    %107 = vector.load %arg7[%c0_44, %c0_45] : memref<8x32xf32, #tpu.memory_space<vmem>>, vector<8x32xf32>
    tpu.vector_store %arg7[%c0_44, %c0_45], %106 {strides = array<i32>} : memref<8x32xf32, #tpu.memory_space<vmem>>, vector<8x32xf32>,
    return
  }
  func.func @transform_0(%arg0: i32) -> (i32, i32) {
    %c0_i32 = arith.constant 0 : i32
    %c0_i32_0 = arith.constant 0 : i32
    return %arg0, %c0_i32 : i32, i32
  }
  func.func @transform_1(%arg0: i32) -> (i32, i32) {
    %c0_i32 = arith.constant 0 : i32
    %c0_i32_0 = arith.constant 0 : i32
    return %arg0, %c0_i32 : i32, i32
  }
  func.func @transform_2(%arg0: i32) -> (i32, i32) {
    %c0_i32 = arith.constant 0 : i32
    %c0_i32_0 = arith.constant 0 : i32
    return %arg0, %c0_i32 : i32, i32
  }
  func.func @transform_3(%arg0: i32) -> (i32, i32, i32) {
    %c0_i32 = arith.constant 0 : i32
    %c0_i32_0 = arith.constant 0 : i32
    %c0_i32_1 = arith.constant 0 : i32
    %c0_i32_2 = arith.constant 0 : i32
    return %c0_i32, %c0_i32_0, %c0_i32_1 : i32, i32, i32
  }
  func.func @transform_4(%arg0: i32) -> (i32, i32, i32) {
    %c0_i32 = arith.constant 0 : i32
    %c0_i32_0 = arith.constant 0 : i32
    %c0_i32_1 = arith.constant 0 : i32
    %c0_i32_2 = arith.constant 0 : i32
    return %c0_i32, %c0_i32_0, %c0_i32_1 : i32, i32, i32
  }
  func.func @transform_5(%arg0: i32) -> (i32, i32) {
    %c0_i32 = arith.constant 0 : i32
    %c0_i32_0 = arith.constant 0 : i32
    %c0_i32_1 = arith.constant 0 : i32
    return %c0_i32, %c0_i32_0 : i32, i32
  }
  func.func @transform_6(%arg0: i32) -> (i32, i32) {
    %c0_i32 = arith.constant 0 : i32
    %c0_i32_0 = arith.constant 0 : i32
    return %arg0, %c0_i32 : i32, i32
  }
}

</mosaic_0001>

<bundles_post_ra>
// kernel: tpu_custom_call.1
= control target key start
LH: loop header
LB: loop body
LE: loop exit
PB: predicated region body
PF: predicated region fallthrough
CT: control target
= control target key end

     0   :  { %s1685_s0 = inlined_call_operand.hbm [shape: f32[16,32], index: 0, kind: input, shape index: {}]   ;;  %s1686_s1 = inlined_call_operand.hbm [shape: f32[16,32], index: 1, kind: input, shape index: {}]   ;;  %s1687_s2 = inlined_call_operand.hbm [shape: f32[16,32], index: 2, kind: input, shape index: {}]   ;;  %s1688_s3 = inlined_call_operand.hbm [shape: f32[3,32,32], index: 3, kind: input, shape index: {}]   ;;  %s1689_s4 = inlined_call_operand.hbm [shape: f32[4,1,32], index: 4, kind: input, shape index: {}]   ;;  %s1690_s5 = inlined_call_operand.hbm [shape: f32[32,32], index: 5, kind: input, shape index: {}]   ;;  %s1691_s6 = inlined_call_operand.hbm [shape: f32[16,32], index: 6, kind: output, shape index: {}]  }
   0x1   :  { %1700 = sst [smem:[#allocation23_spill]] %s1686_s1 }
   0x2   :  { %1701 = sst [smem:[#allocation24_spill]] %s1688_s3 }
   0x3   :  { %1702 = sst [smem:[#allocation25_spill]] %s1689_s4 }
   0x4   :  { %11 = vsyncpa [#allocation3], 0 }
   0x5   :  { %13 = vsyncpa [#allocation3 + $0x1], 0 }
   0x6   :  { %14 = vsyncpa [#allocation6], 0 }
   0x7   :  { %16 = vsyncpa [#allocation6 + $0x1], 0 }
   0x8   :  { %17 = vsyncpa [#allocation9], 0 }
   0x9   :  { %18 = vsyncpa [#allocation12], 0 }
   0xa   :  { %19 = vsyncpa [#allocation4], 0 }
   0xb   :  { %21 = vsyncpa [#allocation4 + $0x1], 0  ;;  %s1425_s21 = smov 0   ;;  %s1427_s22 = smov 0  }
   0xc   :  { %s1429_s23 = smov 0   ;;  %s1431_s24 = smov 0  }
   0xd LB: > { %1703 = sst [smem:[#allocation19_spill]] %s1375_s24  ;;  %s1449_s28 = sadd.s32 4294967295, %s1375_s24   ;;  %s1375_s24 = sphi %s1431_s24, %s1726_s24   ;;  %s1371_s23 = sphi %s1429_s23, %s1730_s23   ;;  %s1367_s22 = sphi %s1427_s22, %s1729_s22   ;;  %s1363_s21 = sphi %s1425_s21, %s1728_s21  }
   0xe   : > { %s1704_s3 = sld [smem:[#allocation24_spill]]  ;;  %p961_p0 = scmp.ge.s32.totalorder %s1375_s24, 1 }
   0xf   : > { %p1699_p1 = scmp.eq.s32.totalorder %s1449_s28, 0  ;;  %p199_p2 = scmp.lt.s32.totalorder %s1375_s24, 3 }
  0x10   : > { %s1377_s30 = smov [#allocation8]   ;;  %s1692_s9 = smov 128  }
  0x11   : > { %p1454_p3 = pnand %p961_p0, %p199_p2  ;;  %s212_s7 = sshll.u32 %s1377_s30, 4  ;;  %s213_s7 = int_to_ptr.vmem [resolvable:$true] %s212_s7 }
  0x12   : > { %s1694_s10 = smov 8   ;;  %s960_s11 = sadd.s32 4294967294, %s1375_s24  }
  0x13   : > { %p1020_p4 = pneg %p1454_p3  ;;  %s1474_s12 = sadd.s32 1, %s1375_s24  }
  0x14   : > { %s210_s27 = sshll.u32 %s1704_s3, 4  ;;  %1707 = sst [smem:[#allocation20_spill]] %s1474_s12  ;;  %s211_s27 = int_to_ptr.hbm [resolvable:$true] %s210_s27 }
  0x15   : > { %p1463_p6 = pnand %p1020_p4, %p1699_p1  ;;  %s34_s13 = sadd.s32 1, %s1371_s23 }
  0x16   : > { %s31_s14 = ssub.s32 %s1375_s24, %s1474_s12  ;;  %p41_p7 = scmp.ne.s32.totalorder %s1371_s23, %s1367_s22 }
  0x17   : > { %1023 = dma.hbm_to_vmem [thread:$0]  (!%p1463_p6), %s211_s27, 1536, %s213_s7, [#allocation9], %s1692_s9, %s1692_s9, %s1694_s10  }
  0x18   : > { %p32_p8 = scmp.eq.s32.totalorder %s31_s14, 0  ;;  %p42_p9 = scmp.eq.s32.totalorder %s1375_s24, 0 }
  0x19   : > { %p47_p10 = scmp.ne.s32.totalorder %s1367_s22, %s1363_s21  ;;  %p186_p11 = scmp.eq.s32.totalorder %s1449_s28, 1 }
  0x1a   : > { %s1486_s15 = scalar_select %p32_p8, %s1371_s23, %s34_s13  }
  0x1b   : > { %p43_p12 = por %p42_p9, %p41_p7  ;;  %p1490_p13 = por %p1699_p1, %p47_p10 }
  0x1c   : > { %1708 = sst [smem:[#allocation21_spill]] %s1486_s15  ;;  %p1494_p0 = por %p186_p11, %p41_p7 }
  0x1d   : > { %p192_p2 = scmp.eq.s32.totalorder %s960_s11, 1  ;;  %p1047_p4 = scmp.lt.s32.totalorder %s1375_s24, 2 }
  0x1e   : > { %s1693_s18 = sand.u32 1, %s1371_s23   ;;  %s1509_s25 = sshll.u32 %s1375_s24, 3 }
  0x1f   : > { %p1500_p5 = por %p192_p2, %p47_p10  ;;  %s1506_s20 = sshll.u32 %s1693_s18, 3 }
  0x20   : > { %p1511_p8 = pnand %p1047_p4, %p43_p12  ;;  %s273_s27 = sand.u32 1, %s1375_s24  }
  0x21   : > { %s1711_s19 = scalar_select %p1500_p5, 1, 0 }
  0x22   : > { %s1714_s1 = sld [smem:[#allocation23_spill]]  ;;  %s277_s13 = scalar_lea.vmem [#allocation5], %s1506_s20 }
  0x23   : > { %1712 = sst [smem:[#allocation22_spill]] %s1711_s19  ;;  %s285_s14 = sshll.u32 %s277_s13, 4  ;;  %s286_s14 = int_to_ptr.vmem [resolvable:$true] %s285_s14 }
  0x24   : > { %s1715_s4 = sld [smem:[#allocation25_spill]]  ;;  %s1524_s15 = scalar_lea.sflag [#allocation6], %s273_s27 }
  0x25   : > { %p1151_p9 = pneg %p1511_p8 }
  0x28   : > { %s281_s11 = scalar_lea.hbm %s1714_s1, %s1509_s25 }
  0x29   : > { %s283_s9 = sshll.u32 %s281_s11, 4  ;;  %s1154_s11 = scalar_lea.hbm %s1714_s1, 16  ;;  %s284_s9 = int_to_ptr.hbm [resolvable:$true] %s283_s9 }
  0x2a   : > { %s224_s3 = sshll.u32 %s1715_s4, 4  ;;  %s1147_s12 = sshra.s32 %s284_s9, 4  ;;  %s1148_s12 = int_to_ptr.hbm [resolvable:$true] %s1147_s12  ;;  %s225_s3 = int_to_ptr.hbm [resolvable:$true] %s224_s3 }
  0x2b   : > { %s1149_s19 = scalar_lea.hbm %s1148_s12, 8  ;;  %p1155_p12 = scmp.lt.s32.totalorder %s1148_s12, %s1714_s1 }
  0x2c   : > { %p1150_p7 = scmp.ne.s32.totalorder %s1148_s12, %s1149_s19  ;;  %p1156_p2 = scmp.lt.s32.totalorder %s1154_s11, %s1149_s19 }
  0x2e   : > { %p1152_p10 = pnand %p1151_p9, %p1150_p7  ;;  %p1157_p4 = por %p1156_p2, %p1155_p12 }
  0x30   : > { %p1153_p11 = pneg %p1152_p10 }
  0x32   : > { %p1158_p1 = pnand %p1157_p4, %p1153_p11 }
  0x34   : > { %1161 = shalt.err (!%p1158_p1)
}
  0x35   : > { %1036 = dma.hbm_to_vmem [thread:$0]  (!%p1511_p8), %s284_s9, 128, %s286_s14, %s1524_s15  }
  0x36   : > { %s1380_s10 = smov [#allocation10]   ;;  %s1381_s27 = smov 16  }
  0x37   : > { %s226_s18 = sshll.u32 %s1380_s10, 4  ;;  %s1382_s24 = smov 1   ;;  %s227_s18 = int_to_ptr.vmem [resolvable:$true] %s226_s18 }
  0x38   : > { %1026 = dma.hbm_to_vmem [thread:$0]  (!%p1463_p6), %s225_s3, 64, %s227_s18, [#allocation9], %s1381_s27, %s1381_s27, %s1382_s24  }
  0x39   : > { %s238_s30 = sshll.u32 %s1690_s5, 4  ;;  %s1383_s7 = smov [#allocation11]   ;;  %s239_s30 = int_to_ptr.hbm [resolvable:$true] %s238_s30 }
  0x3a   : > { %s240_s11 = sshll.u32 %s1383_s7, 4  ;;  %s1716_s9 = smov 8   ;;  %s241_s11 = int_to_ptr.vmem [resolvable:$true] %s240_s11 }
  0x3b   : > { %s1717_s14 = smov 128   ;;  %s262_s1 = scalar_lea.hbm %s1685_s0, %s1509_s25 }
  0x3c   : > { %1029 = dma.hbm_to_vmem [thread:$0]  (!%p1463_p6), %s239_s30, 512, %s241_s11, [#allocation12], %s1717_s14, %s1717_s14, %s1716_s9  }
  0x3d   : > { %s264_s4 = sshll.u32 %s262_s1, 4  ;;  %s258_s3 = scalar_lea.vmem [#allocation2], %s1506_s20  ;;  %s265_s4 = int_to_ptr.hbm [resolvable:$true] %s264_s4 }
  0x3e   : > { %s266_s18 = sshll.u32 %s258_s3, 4  ;;  %s1718_s27 = sand.u32 1, %s1371_s23   ;;  %s267_s18 = int_to_ptr.vmem [resolvable:$true] %s266_s18 }
  0x3f   : > { %s255_s24 = scalar_lea.sflag [#allocation3], %s1718_s27  ;;  %s1237_s12 = sshra.s32 %s265_s4, 4  ;;  %s1238_s12 = int_to_ptr.hbm [resolvable:$true] %s1237_s12 }
  0x40   : > { %s1239_s19 = scalar_lea.hbm %s1238_s12, 8  ;;  %s1244_s7 = scalar_lea.hbm %s1685_s0, 16 }
  0x41   : > { %p1240_p1 = scmp.ne.s32.totalorder %s1238_s12, %s1239_s19  ;;  %p1245_p6 = scmp.lt.s32.totalorder %s1238_s12, %s1685_s0 }
  0x42   : > { %p1246_p11 = scmp.lt.s32.totalorder %s1244_s7, %s1239_s19 }
  0x43   : > { %p1242_p7 = pnand %p1240_p1, %p1151_p9 }
  0x44   : > { %p1247_p12 = por %p1246_p11, %p1245_p6 }
  0x45   : > { %p1243_p10 = pneg %p1242_p7 }
  0x47   : > { %p1248_p2 = pnand %p1247_p12, %p1243_p10 }
  0x49   : > { %1251 = shalt.err (!%p1248_p2)
}
  0x4a   : > { %1033 = dma.hbm_to_vmem [thread:$0]  (!%p1511_p8), %s265_s4, 128, %s267_s18, %s255_s24  }
  0x4b   : > { %s300_s13 = scalar_lea.hbm %s1687_s2, %s1509_s25  ;;  %s296_s3 = scalar_lea.vmem [#allocation7], %s1506_s20 }
  0x4c   : > { %s302_s10 = sshll.u32 %s300_s13, 4  ;;  %s304_s27 = sshll.u32 %s296_s3, 4  ;;  %s303_s10 = int_to_ptr.hbm [resolvable:$true] %s302_s10  ;;  %s305_s27 = int_to_ptr.vmem [resolvable:$true] %s304_s27 }
  0x4d   : > { %s1267_s12 = sshra.s32 %s303_s10, 4  ;;  %s1274_s4 = scalar_lea.hbm %s1687_s2, 16  ;;  %s1268_s12 = int_to_ptr.hbm [resolvable:$true] %s1267_s12 }
  0x4e   : > { %s1269_s19 = scalar_lea.hbm %s1268_s12, 8  ;;  %p1275_p10 = scmp.lt.s32.totalorder %s1268_s12, %s1687_s2 }
  0x4f   : > { %p1270_p4 = scmp.ne.s32.totalorder %s1268_s12, %s1269_s19  ;;  %p1276_p6 = scmp.lt.s32.totalorder %s1274_s4, %s1269_s19 }
  0x51   : > { %p1272_p1 = pnand %p1270_p4, %p1151_p9  ;;  %p1277_p11 = por %p1276_p6, %p1275_p10 }
  0x53   : > { %p1273_p7 = pneg %p1272_p1 }
  0x55   : > { %p1278_p12 = pnand %p1277_p11, %p1273_p7 }
  0x57   : > { %1281 = shalt.err (!%p1278_p12)
}
  0x58   : > { %1039 = dma.hbm_to_vmem [thread:$0]  (!%p1511_p8), %s303_s10, 128, %s305_s27, %s1524_s15  }
  0x59   : > { %313 = sbr.rel (%p1454_p3) target bundleno = 1140 (0x474), region = 44  ;;  %s1588_s20 = sand.u32 (!%p1454_p3), 1, %s1367_s22  }
  0x5a   : > { %s1591_s25 = sshll.u32 (!%p1454_p3), %s1588_s20, 3  ;;  %s316_s7 = scalar_lea.sflag (!%p1454_p3), [#allocation3], %s1588_s20 }
  0x5b   : > { %s319_s11 = scalar_lea.vmem (!%p1454_p3), [#allocation2], %s1591_s25 }
  0x5e   : > { %1342 = dma.done.wait (%p1490_p13), %s316_s7, 128  }
  0x5f   : > { %1344 = vsyncadd (%p1490_p13), %s316_s7, 4294967168  ;;  %s325_s29 = sand.u32 1, %s1449_s28   ;;  %s329_s26 = scalar_lea.vmem [#allocation5], %s1591_s25 }
  0x60   : > { %s326_s15 = scalar_lea.sflag [#allocation6], %s325_s29 }
  0x61   : > { %1346 = dma.done.wait (%p1490_p13), %s326_s15, 256  }
  0x62   : > { %1348 = vsyncadd (%p1490_p13), %s326_s15, 4294967040  ;;  %s339_s1 = scalar_lea.vmem [#allocation7], %s1591_s25  ;;  %p1719_p3 = scmp.eq.s32.totalorder %s1449_s28, 0 }
  0x64   : > { %1350 = dma.done.wait (%p1719_p3), [#allocation9], 1600   ;;  %p1720_p8 = pmov %p1719_p3 }
  0x65   : > { %p1721_p9 = pmov %p1719_p3 }
  0x66   : > { %1352 = vsyncadd (%p1720_p8), [#allocation9], 4294965696 }
  0x67   : > { %1354 = dma.done.wait (%p1721_p9), [#allocation12], 512   ;;  %p1722_p2 = pmov %p1719_p3 }
  0x68   : > { %v432_v0 = vld [vmem:[#allocation8 + $0x38] sm:$0xff]  ;;  %v431_v1 = vld [vmem:[#allocation8 + $0x30] sm:$0xff]  ;;  %v430_v4 = vld [vmem:[#allocation8 + $0x28] sm:$0xff]  ;;  %vm403_vm0 = vcmask 261120   ;;  %vm495_vm1 = vcmask 64512   ;;  %s1384_s16 = smov 104  }
  0x69   : > { %1356 = vsyncadd (%p1722_p2), [#allocation12], 4294966784  ;;  %v398_v2 = vld [vmem:[#allocation8 + $0x18] sm:$0xff]  ;;  %453 = vmatpush.msra.mxu1 %v432_v0  ;;  %v397_v3 = vld [vmem:[#allocation8 + $0x10] sm:$0xff]  ;;  %s1385_s9 = smov 120   ;;  %s1386_s14 = smov 112  }
  0x6a   : > { %419 = vmatpush.msra.mxu0 %v398_v2  ;;  %v396_v5 = vld [vmem:[#allocation8 + $0x8] sm:$0xff]  ;;  %v429_v6 = vld [vmem:[#allocation8 + $0x20] sm:$0xff]  ;;  %v394_v9 = vld [vmem:[%s319_s11] sm:$0xff]  ;;  %s1387_s13 = smov 16   ;;  %s1388_s10 = smov 8   ;;  %vm765_vm2 = vcmask 130048  }
  0x6b   : > { %454 = vmatpush.msra.mxu1 %v431_v1  ;;  %v395_v7 = vld [vmem:[#allocation8] sm:$0xff]  ;;  %v466_v16 = vld [vmem:[#allocation8 + $0x58] sm:$0xff]  ;;  %v465_v17 = vld [vmem:[#allocation8 + $0x50] sm:$0xff]  ;;  %s1389_s3 = smov 24   ;;  %vm767_vm3 = vcmask 195584   ;;  %s997_s27 = sshll.u32 %s1449_s28, 3 }
  0x6c   : > { %420 = vmatpush.msra.mxu0 %v397_v3  ;;  %v427_v8 = vld [vmem:[%s329_s26] sm:$0xff]  ;;  %487 = vmatpush.msra.mxu2 %v466_v16  ;;  %v461_v20 = vld [vmem:[%s339_s1] sm:$0xff]  ;;  %s813_s8 = scalar_lea.hbm %s1691_s6, %s997_s27  ;;  %s393_s30 = scalar_lea.vmem [#allocation13], %s1591_s25 }
  0x6d   : > { %455 = vmatpush.msra.mxu1 %v430_v4  ;;  %v1097_v10 = vld [vmem:[#allocation10 + $0x1] ss:$0 sm:$0xff]  ;;  %v1098_v11 = vld [vmem:[#allocation10] ss:$0 sm:$0xff]  ;;  %v464_v18 = vld [vmem:[#allocation8 + $0x48] sm:$0xff]  ;;  %s815_s4 = sshll.u32 %s393_s30, 4  ;;  %s816_s4 = int_to_ptr.vmem [resolvable:$true] %s815_s4 }
  0x6e   : > { %421 = vmatpush.msra.mxu0 %v396_v5  ;;  %488 = vmatpush.msra.mxu2 %v465_v17  ;;  %v463_v19 = vld [vmem:[#allocation8 + $0x40] sm:$0xff]  ;;  %s817_s18 = sshll.u32 %s813_s8, 4  ;;  %s803_s24 = scalar_lea.sflag [#allocation4], %s1588_s20  ;;  %s818_s18 = int_to_ptr.hbm [resolvable:$true] %s817_s18 }
  0x6f   : > { %456 = vmatpush.msra.mxu1 %v429_v6  ;;  %v1099_v29 = vld [vmem:[#allocation10 + $0x2] ss:$0 sm:$0xff]  ;;  %v769_v16 = vld [vmem:[#allocation11] sm:$0xff]  ;;  %s1311_s7 = sshra.s32 %s818_s18, 4  ;;  %s1317_s25 = scalar_lea.hbm %s1691_s6, 16  ;;  %s1312_s7 = int_to_ptr.hbm [resolvable:$true] %s1311_s7 }
  0x70   : > { %422 = vmatpush.msra.mxu0 %v395_v7  ;;  %981 = vmatmul.msk.f32.vlgmr.msra.gmra.mxu1 %vm403_vm0, %v427_v8  ;;  %s1313_s11 = scalar_lea.hbm %s1312_s7, 8  ;;  %p1318_p7 = scmp.lt.s32.totalorder %s1312_s7, %s1691_s6 }
  0x71   : > { %980 = vmatmul.msk.f32.vlgmr.msra.gmra.mxu0 %vm403_vm0, %v394_v9  ;;  %489 = vmatpush.msra.mxu2 %v464_v18  ;;  %p1314_p13 = scmp.ne.s32.totalorder %s1312_s7, %s1313_s11  ;;  %p1319_p10 = scmp.lt.s32.totalorder %s1317_s25, %s1313_s11 }
  0x73   : > { %490 = vmatpush.msra.mxu2 %v463_v19  ;;  %p1315_p4 = pnand %p1314_p13, %p1494_p0  ;;  %p1320_p6 = por %p1319_p10, %p1318_p7 }
  0x74   : > { %982 = vmatmul.msk.f32.vlgmr.msra.gmra.mxu2 %vm403_vm0, %v461_v20 }
  0x75   : > { %p1316_p1 = pneg %p1315_p4 }
  0x77   : > { %p1321_p11 = pnand %p1320_p6, %p1316_p1 }
  0xed   : > { %v458_v12 = vpop.f32.mrf.mxu1 }
  0xee   : > { %v424_v13 = vpop.f32.mrf.mxu0  ;;  %v459_v14 = vadd.f32 %v1097_v10, %v458_v12 }
  0xef   : > { %v425_v15 = vadd.f32 %v1098_v11, %v424_v13  ;;  %v772_v13 = vld [vmem:[#allocation11 + $0x18] sm:$0xff] }
  0xf0   : > { %689 = vrot.lane.b32.xlu2 %v459_v14, %s1384_s16  ;;  %558 = vrot.lane.b32.xlu1 %v459_v14, %s1385_s9 }
  0xf1   : > { %624 = vrot.lane.b32.xlu0 %v459_v14, %s1386_s14  ;;  %983 = vmatpush.xpose.msk.msra.mxu3 %vm495_vm1, %v459_v14  ;;  %v771_v14 = vld [vmem:[#allocation11 + $0x10] sm:$0xff] }
  0xf4   : > { %984 = vmatmul.msk.f32.vlgmr.msra.gmra.mxu3 %vm495_vm1, %v425_v15 }
  0xf7   : > { %v492_v30 = vpop.f32.mrf.mxu2 }
  0xf8   : > { %687 = vrot.lane.b32.xlu2 %v425_v15, %s1384_s16  ;;  %556 = vrot.lane.b32.xlu1 %v425_v15, %s1385_s9  ;;  %v493_v31 = vadd.f32 %v1099_v29, %v492_v30 }
  0xf9   : > { %622 = vrot.lane.b32.xlu0 %v425_v15, %s1386_s14  ;;  %v770_v15 = vld [vmem:[#allocation11 + $0x8] sm:$0xff] }
  0xfa   : > { %551 = vmatpush.msrb.mxu3 %v493_v31 }
 0x14a   : > { %v690_v22 = vpop.permute.xlu2 %689 }
 0x152   : > { %v688_v26 = vpop.permute.xlu2 %687 }
 0x162   : > { %v559_v21 = vpop.permute.xlu1 %558 }
 0x163   : > { %v625_v23 = vpop.permute.xlu0 %624  ;;  %986 = vmatpush.xpose.msk.msrb.mxu0 %vm495_vm1, %v559_v21 }
 0x164   : > { %989 = vmatpush.xpose.msk.msrb.mxu2 %vm495_vm1, %v625_v23  ;;  %v1100_v23 = vld [vmem:[#allocation10 + $0x3] ss:$0 sm:$0xff] }
 0x167   : > { %992 = vmatpush.xpose.msk.msra.mxu0 %vm495_vm1, %v690_v22 }
 0x168   : > { %793 = vmatpush.msra.mxu2 %v772_v13 }
 0x16a   : > { %v557_v24 = vpop.permute.xlu1 %556  ;;  %794 = vmatpush.msra.mxu2 %v771_v14 }
 0x16b   : > { %v623_v25 = vpop.permute.xlu0 %622  ;;  %987 = vmatmul.msk.f32.vlgmr.msrb.gmra.mxu0 %vm495_vm1, %v557_v24 }
 0x16c   : > { %990 = vmatmul.msk.f32.vlgmr.msrb.gmra.mxu2 %vm495_vm1, %v623_v25 }
 0x16d   : > { %795 = vmatpush.msra.mxu2 %v770_v15 }
 0x16f   : > { %796 = vmatpush.msra.mxu2 %v769_v16 }
 0x173   : > { %993 = vmatmul.msk.f32.vlgmr.msra.gmra.mxu0 %vm495_vm1, %v688_v26 }
 0x177   : > { %v519_v27 = vpop.f32.mrf.mxu3 }
 0x178   : > { %v522_v28 = vsel %vm495_vm1, %v519_v27, -inf }
 0x179   : > { %523 = vmax.xlane.f32.xlu0 %v522_v28 }
 0x1e8   : > { %v581_v32 = vpop.f32.mrf.mxu0 }
 0x1e9   : > { %v584_v33 = vsel %vm495_vm1, %v581_v32, -inf }
 0x1ea   : > { %585 = vmax.xlane.f32.xlu1 %v584_v33 }
 0x1ec   : > { %v524_v34 = vpop.xlane.xlu0 %523 }
 0x1ed   : > { %v525_v35 = vsub.f32 %v519_v27, %v524_v34 }
 0x1ef   : > { %v526_v36 = vmul.f32 1.442695, %v525_v35  ;;  %v647_v37 = vpop.f32.mrf.mxu2 }
 0x1f0   : > { %v650_v38 = vsel %vm495_vm1, %v647_v37, -inf  ;;  %v712_v39 = vpop.f32.mrf.mxu0 }
 0x1f1   : > { %1101 = vpow2.f32 %v526_v36  ;;  %651 = vmax.xlane.f32.xlu2 %v650_v38  ;;  %v715_v41 = vsel %vm495_vm1, %v712_v39, -inf }
 0x1f7   : > { %v1102_v40 = vpop.eup %1101 }
 0x1f8   : > { %v528_v42 = vsel %vm495_vm1, %v1102_v40, 0.0 }
 0x1f9   : > { %716 = vmax.xlane.f32.xlu2 %v715_v41  ;;  %529 = vadd.xlane.f32.xlu0 %v528_v42 }
 0x25d   : > { %v586_v43 = vpop.xlane.xlu1 %585 }
 0x25e   : > { %v587_v44 = vsub.f32 %v581_v32, %v586_v43 }
 0x260   : > { %v588_v45 = vmul.f32 1.442695, %v587_v44 }
 0x262   : > { %1103 = vpow2.f32 %v588_v45 }
 0x264   : > { %v652_v46 = vpop.xlane.xlu2 %651 }
 0x265   : > { %v653_v47 = vsub.f32 %v647_v37, %v652_v46 }
 0x267   : > { %v654_v48 = vmul.f32 1.442695, %v653_v47 }
 0x268   : > { %v1104_v49 = vpop.eup %1103 }
 0x269   : > { %1105 = vpow2.f32 %v654_v48  ;;  %v590_v50 = vsel %vm495_vm1, %v1104_v49, 0.0 }
 0x26a   : > { %591 = vadd.xlane.f32.xlu1 %v590_v50 }
 0x26c   : > { %v717_v51 = vpop.xlane.xlu2 %716  ;;  %v530_v52 = vpop.xlane.xlu0 %529 }
 0x26d   : > { %v718_v53 = vsub.f32 %v712_v39, %v717_v51  ;;  %1107 = vrcp.f32 %v530_v52 }
 0x26f   : > { %v1106_v54 = vpop.eup %1105  ;;  %v719_v55 = vmul.f32 1.442695, %v718_v53 }
 0x270   : > { %v656_v56 = vsel %vm495_vm1, %v1106_v54, 0.0 }
 0x271   : > { %1109 = vpow2.f32 %v719_v55  ;;  %657 = vadd.xlane.f32.xlu2 %v656_v56 }
 0x273   : > { %v1108_v57 = vpop.eup %1107 }
 0x274   : > { %v532_v58 = vmul.f32 %v1108_v57, %v1102_v40 }
 0x276   : > { %985 = vmatmul.msk.f32.vlgmr.msrb.gmra.mxu3 %vm495_vm1, %v532_v58 }
 0x277   : > { %v1110_v59 = vpop.eup %1109 }
 0x278   : > { %v721_v60 = vsel %vm495_vm1, %v1110_v59, 0.0 }
 0x279   : > { %722 = vadd.xlane.f32.xlu0 %v721_v60 }
 0x283   : > { %596 = vrot.lane.b32.xlu1 %v493_v31, %s1385_s9 }
 0x289   : > { %661 = vrot.lane.b32.xlu2 %v493_v31, %s1386_s14 }
 0x28d   : > { %726 = vrot.lane.b32.xlu0 %v493_v31, %s1384_s16 }
 0x2dd   : > { %v592_v62 = vpop.xlane.xlu1 %591 }
 0x2e4   : > { %v658_v61 = vpop.xlane.xlu2 %657 }
 0x2e5   : > { %1111 = vrcp.f32 %v658_v61 }
 0x2e6   : > { %1113 = vrcp.f32 %v592_v62 }
 0x2eb   : > { %v1112_v63 = vpop.eup %1111 }
 0x2ec   : > { %v660_v0 = vmul.f32 %v1112_v63, %v1106_v54  ;;  %v662_v1 = vpop.permute.xlu2 %661  ;;  %v1114_v2 = vpop.eup %1113 }
 0x2ed   : > { %682 = vmatpush.msra.mxu3 %v662_v1  ;;  %v723_v3 = vpop.xlane.xlu0 %722  ;;  %v594_v5 = vmul.f32 %v1114_v2, %v1104_v49 }
 0x2ee   : > { %991 = vmatmul.msk.f32.vlgmr.msra.gmra.mxu3 %vm495_vm1, %v660_v0  ;;  %1115 = vrcp.f32 %v723_v3 }
 0x2f4   : > { %v1116_v6 = vpop.eup %1115 }
 0x2f5   : > { %v597_v4 = vpop.permute.xlu1 %596  ;;  %v725_v7 = vmul.f32 %v1116_v6, %v1110_v59 }
 0x2f6   : > { %617 = vmatpush.msrb.mxu1 %v597_v4 }
 0x2f7   : > { %988 = vmatmul.msk.f32.vlgmr.msrb.gmra.mxu1 %vm495_vm1, %v594_v5 }
 0x2f9   : > { %v553_v9 = vpop.f32.mrf.mxu3 }
 0x2ff   : > { %v727_v8 = vpop.permute.xlu0 %726 }
 0x300   : > { %747 = vmatpush.msra.mxu1 %v727_v8 }
 0x301   : > { %994 = vmatmul.msk.f32.vlgmr.msra.gmra.mxu1 %vm495_vm1, %v725_v7 }
 0x371   : > { %v684_v10 = vpop.f32.mrf.mxu3 }
 0x372   : > { %757 = vrot.lane.b32.xlu0 %v684_v10, %s1387_s13 }
 0x374   : > { %v619_v11 = vpop.f32.mrf.mxu1 }
 0x375   : > { %753 = vrot.lane.b32.xlu1 %v619_v11, %s1388_s10 }
 0x37e   : > { %v749_v12 = vpop.f32.mrf.mxu1 }
 0x37f   : > { %761 = vrot.lane.b32.xlu2 %v749_v12, %s1389_s3 }
 0x3d9   : > { %v762_v20 = vpop.permute.xlu2 %761 }
 0x3e4   : > { %v758_v18 = vpop.permute.xlu0 %757 }
 0x3e7   : > { %v754_v17 = vpop.permute.xlu1 %753 }
 0x3e8   : > { %v764_v19 = vsel %vm495_vm1, %v553_v9, %v754_v17 }
 0x3e9   : > { %v766_v21 = vsel %vm765_vm2, %v764_v19, %v758_v18 }
 0x3ea   : > { %v768_v22 = vsel %vm767_vm3, %v766_v21, %v762_v20 }
 0x3eb   : > { %995 = vmatmul.msk.f32.vlgmr.msra.gmra.mxu2 %vm403_vm0, %v768_v22 }
 0x46e   : > { %v798_v24 = vpop.f32.mrf.mxu2 }
 0x46f   : > { %v799_v25 = vadd.f32 %v1100_v23, %v798_v24 }
 0x471   : > { %801 = vst.msk [vmem:[%s393_s30] sm:$0xff] %vm403_vm0, %v799_v25 }
 0x472   : > { %1324 = shalt.err (!%p1321_p11)
}
 0x473   : > { %1018 = dma.vmem_to_hbm [thread:$0]  (%p1494_p0), %s816_s4, 128, %s818_s18, %s803_s24  }
 0x474 PF: > { %s1724_s1 = sld [smem:[#allocation19_spill]]  ;;  %s829_s16 = sand.u32 1, %s1363_s21  }
 0x475   : > { %s830_s9 = scalar_lea.sflag [#allocation4], %s829_s16 }
 0x47a   : > { %p1725_p12 = scmp.ge.s32.totalorder %s1724_s1, 2 }
 0x47c   : > { %p1041_p3 = pnand %p1725_p12, %p1500_p5 }
 0x47e   : > { %p1042_p8 = pneg %p1041_p3 }
 0x480   : > { %1358 = dma.done.wait (%p1042_p8), %s830_s9, 128  }
 0x481   : > { %1360 = vsyncadd (%p1042_p8), %s830_s9, 4294967168  ;;  %s1726_s24 = sld [smem:[#allocation20_spill]]  ;;  %s1728_s21 = smov %s1367_s22 }
 0x482   : > { %s1727_s14 = sld [smem:[#allocation21_spill]]  ;;  %s1729_s22 = smov %s1371_s23 }
 0x487   : > { %p24_p9 = scmp.ge.s32.totalorder %s1726_s24, 4  }
 0x488   : > { %s1730_s23 = smov %s1727_s14 }
 0x489   :  { %26 = sbr.rel (!%p24_p9) target bundleno = 13 (0xd), region = 130 }
 0x48e   :  { %836 = vsyncpa [#allocation3], 1 }
 0x48f   :  { %838 = vsyncpa [#allocation3 + $0x1], 1 }
 0x490   :  { %839 = vsyncpa [#allocation6], 1 }
 0x491   :  { %841 = vsyncpa [#allocation6 + $0x1], 1 }
 0x492   :  { %842 = vsyncpa [#allocation9], 1 }
 0x493   :  { %843 = vsyncpa [#allocation12], 1 }
 0x494   :  { %844 = vsyncpa [#allocation4], 1 }
 0x495   :  { %846 = vsyncpa [#allocation4 + $0x1], 1 }

</bundles_post_ra>
